<compile_context>
chip_gen: v6e
topology: v6e:2x2x1
jax: 0.10.0
libtpu: 0.0.40
codegen_flags: <defaults>
</compile_context>

<pallas_src>
import numpy as np
import jax
import jax.numpy as jnp
from jax.experimental import pallas as pl
from jax.experimental.pallas import tpu as pltpu


_EPS = 1e-4
_LOG_LO = float(np.log(_EPS))          # log(1e-4)
_LOG_HI = float(np.log(1.0 - _EPS))    # log(1 - 1e-4)


def _ttf_loss_kernel(base_ref, hm_pred_ref, hm_gt_ref, wh_pred_ref, box_ref, w_ref,
                     out_ref,
                     acc_pos, acc_neg, acc_cnt, acc_g, acc_m):
    b = pl.program_id(1)           # batch index within this parallel split
    c = pl.program_id(2)           # channel tile index
    nb = pl.num_programs(1)
    nc = pl.num_programs(2)

    # ------------------------------------------------------------------ init
    @pl.when((b == 0) & (c == 0))
    def _init():
        acc_pos[...] = jnp.zeros_like(acc_pos)
        acc_neg[...] = jnp.zeros_like(acc_neg)
        acc_cnt[...] = jnp.zeros_like(acc_cnt)
        acc_g[...] = jnp.zeros_like(acc_g)
        acc_m[...] = jnp.zeros_like(acc_m)

    # -------------------- ct focal partial terms (dominant (TC, HW) path) --
    x = hm_pred_ref[...]            # (TC, HW) logits
    gt = hm_gt_ref[...]             # (TC, HW)

    # log-sigmoid identity: one exp + one log instead of sigmoid + two logs.
    # Clips reproduce clip(sigmoid(x), 1e-4, 1-1e-4) semantics on the logs.
    e = jnp.exp(-x)
    p = jnp.clip(1.0 / (1.0 + e), _EPS, 1.0 - _EPS)
    log1pe = jnp.log(1.0 + e)
    log_p = jnp.clip(-log1pe, _LOG_LO, _LOG_HI)          # log(clipped sigmoid)
    log_1mp = jnp.clip(-x - log1pe, _LOG_LO, _LOG_HI)    # log(1 - clipped sigmoid)

    pos_inds = (gt == 1.0).astype(jnp.float32)
    neg_inds = (gt < 1.0).astype(jnp.float32)   # keep the compare: padded gt=2 -> 0
    one_m_gt = 1.0 - gt
    neg_w = one_m_gt * one_m_gt
    neg_w = neg_w * neg_w                       # (1 - gt)^4 as two squarings
    one_m_p = 1.0 - p

    pos_l = log_p * (one_m_p * one_m_p) * pos_inds
    neg_l = log_1mp * (p * p) * neg_w * neg_inds

    def _fold_rows(v):
        # (TC, HW) -> (8, HW): relayout-free reshape (sublane index unchanged)
        # + leading-axis sum = pure vreg-wise VPU adds, no XLU per step.
        tc, hw = v.shape
        if tc == 8:
            return v
        return jnp.sum(v.reshape(tc // 8, 8, hw), axis=0)

    acc_pos[...] += _fold_rows(pos_l)
    acc_neg[...] += _fold_rows(neg_l)
    acc_cnt[...] += _fold_rows(pos_inds)

    # -------- GIoU partial terms (once per batch element, sublane-dense) ---
    @pl.when(c == 0)
    def _giou():
        bx = base_ref[0]                     # (8, HW8)
        by = base_ref[1]
        px1 = bx - wh_pred_ref[0]
        py1 = by - wh_pred_ref[1]
        px2 = bx + wh_pred_ref[2]
        py2 = by + wh_pred_ref[3]
        tx1 = box_ref[0]
        ty1 = box_ref[1]
        tx2 = box_ref[2]
        ty2 = box_ref[3]
        w = w_ref[0]

        iw = jnp.maximum(jnp.minimum(px2, tx2) - jnp.maximum(px1, tx1) + 1.0, 0.0)
        ih = jnp.maximum(jnp.minimum(py2, ty2) - jnp.maximum(py1, ty1) + 1.0, 0.0)
        overlap = iw * ih

        ap = (px2 - px1 + 1.0) * (py2 - py1 + 1.0)
        ag = (tx2 - tx1 + 1.0) * (ty2 - ty1 + 1.0)
        u = ap + ag - overlap

        ew = jnp.maximum(jnp.maximum(px2, tx2) - jnp.minimum(px1, tx1) + 1.0, 0.0)
        eh = jnp.maximum(jnp.maximum(py2, ty2) - jnp.minimum(py1, ty1) + 1.0, 0.0)
        enclose = ew * eh

        posm = w > 0.0
        # masked-out positions guarded against div-by-zero (values discarded)
        u_safe = jnp.where(posm, u, 1.0)
        enc_safe = jnp.where(posm, enclose, 1.0)
        ious = overlap / u_safe
        gious = ious - (enc_safe - u_safe) / enc_safe

        acc_g[...] += jnp.where(posm, (1.0 - gious) * w, 0.0)
        acc_m[...] += w

    # ---------- single XLU reduce + one lane-dense store per split ---------
    @pl.when((b == nb - 1) & (c == nc - 1))
    def _finalize():
        pos_sum = jnp.sum(acc_pos[...])
        neg_sum = jnp.sum(acc_neg[...])
        cnt_sum = jnp.sum(acc_cnt[...])
        g_sum = jnp.sum(acc_g[...])
        m_sum = jnp.sum(acc_m[...])
        lane = jax.lax.broadcasted_iota(jnp.int32, (1, 128), 1)
        vec = (jnp.where(lane == 0, pos_sum + neg_sum, 0.0)
               + jnp.where(lane == 1, neg_sum, 0.0)
               + jnp.where(lane == 2, cnt_sum, 0.0)
               + jnp.where(lane == 3, g_sum, 0.0)
               + jnp.where(lane == 4, m_sum, 0.0))
        out_ref[...] = vec


def _round_up(x, m):
    return ((x + m - 1) // m) * m


def _pick_channel_tile(Cp, HWp, cap_bytes):
    """Largest multiple of 8 dividing Cp with a heatmap block <= cap_bytes."""
    best = 8
    t = 16
    while t <= Cp:
        if Cp % t == 0 and t * HWp * 4 <= cap_bytes:
            best = t
        t += 8
    return min(best, Cp)


def ttf_loss(pred_heatmap, pred_wh, heatmap, gt_bboxes, wh_weight_map,
             down_ratio=4, wh_weight=5.0, hm_weight=1.0):
    B, C, H, W = pred_heatmap.shape
    assert pred_wh.shape == (B, 4, H, W)
    assert gt_bboxes.shape == (B, 4, H, W)
    assert wh_weight_map.shape == (B, 1, H, W)

    f32 = jnp.float32
    HW = H * W
    HWp = _round_up(HW, 8)       # GIoU (..., 8, HWp//8) packing needs % 8
    Cp = _round_up(C, 8)         # sublane-dense heatmap tiles
    Bp = B + (B % 2)             # always two parallel splits (megacore on v7x)

    # base_loc construction (glue), flattened lane-dense (2, HW)
    shifts_x = jnp.arange(0, (W - 1) * down_ratio + 1, down_ratio, dtype=f32)
    shifts_y = jnp.arange(0, (H - 1) * down_ratio + 1, down_ratio, dtype=f32)
    shift_y, shift_x = jnp.meshgrid(shifts_y, shifts_x, indexing="ij")
    base_loc = jnp.stack((shift_x, shift_y), axis=0).reshape(2, HW)

    hm_p = pred_heatmap.reshape(B, C, HW)
    hm_g = heatmap.reshape(B, C, HW)
    wh_p = pred_wh.reshape(B, 4, HW)
    box = gt_bboxes.reshape(B, 4, HW)
    wmap = wh_weight_map.reshape(B, 1, HW)

    def pad(a, axis, target, value):
        d = target - a.shape[axis]
        if d == 0:
            return a
        widths = [(0, 0)] * a.ndim
        widths[axis] = (0, d)
        return jnp.pad(a, widths, constant_values=value)

    # neutral padding: gt=2.0 -> pos_inds=0 and neg_inds=0; w=0 -> zero GIoU term
    hm_p = pad(hm_p, 2, HWp, 0.0)
    hm_g = pad(hm_g, 2, HWp, 2.0)
    wh_p = pad(wh_p, 2, HWp, 0.0)
    box = pad(box, 2, HWp, 0.0)
    wmap = pad(wmap, 2, HWp, 0.0)
    base_loc = pad(base_loc, 1, HWp, 0.0)

    hm_p = pad(hm_p, 1, Cp, 0.0)
    hm_g = pad(hm_g, 1, Cp, 2.0)

    hm_p = pad(hm_p, 0, Bp, 0.0)
    hm_g = pad(hm_g, 0, Bp, 2.0)
    wh_p = pad(wh_p, 0, Bp, 0.0)
    box = pad(box, 0, Bp, 0.0)
    wmap = pad(wmap, 0, Bp, 0.0)

    HW8 = HWp // 8
    wh_p = wh_p.reshape(Bp, 4, 8, HW8)
    box = box.reshape(Bp, 4, 8, HW8)
    wmap = wmap.reshape(Bp, 1, 8, HW8)
    base8 = base_loc.reshape(2, 8, HW8)

    TC = _pick_channel_tile(Cp, HWp, cap_bytes=4 << 20)
    nc = Cp // TC
    num_splits = 2
    bps = Bp // num_splits

    # rough VMEM footprint (bytes): heatmap tiles double-buffered, box family,
    # base, accumulators; capped at 48 MiB (v7x has only 64 MiB per TC).
    est_bytes = 4 * (2 * 2 * TC * HWp        # two heatmap inputs, double-buffered
                     + 2 * 9 * HWp           # pred_wh + boxes + weight map
                     + 2 * 2 * HWp           # base
                     + 3 * 8 * HWp           # focal accumulators
                     + 2 * HWp               # giou accumulators
                     + 4 * 128)              # output block
    vmem_limit = int(min(max(int(est_bytes * 1.5), 16 << 20), 48 << 20))

    out = pl.pallas_call(
        _ttf_loss_kernel,
        out_shape=jax.ShapeDtypeStruct((num_splits, 1, 128), f32),
        grid_spec=pltpu.PrefetchScalarGridSpec(
            num_scalar_prefetch=0,
            grid=(num_splits, bps, nc),
            in_specs=[
                pl.BlockSpec((2, 8, HW8), lambda s, b, c: (0, 0, 0)),                      # base_loc
                pl.BlockSpec((None, TC, HWp), lambda s, b, c: (s * bps + b, c, 0)),        # pred_heatmap
                pl.BlockSpec((None, TC, HWp), lambda s, b, c: (s * bps + b, c, 0)),        # heatmap
                pl.BlockSpec((None, 4, 8, HW8), lambda s, b, c: (s * bps + b, 0, 0, 0)),   # pred_wh
                pl.BlockSpec((None, 4, 8, HW8), lambda s, b, c: (s * bps + b, 0, 0, 0)),   # gt_bboxes
                pl.BlockSpec((None, 1, 8, HW8), lambda s, b, c: (s * bps + b, 0, 0, 0)),   # wh weight
            ],
            out_specs=pl.BlockSpec((None, 1, 128), lambda s, b, c: (s, 0, 0)),
            scratch_shapes=[
                pltpu.VMEM((8, HWp), f32),   # pos loss partial sums
                pltpu.VMEM((8, HWp), f32),   # neg loss partial sums
                pltpu.VMEM((8, HWp), f32),   # num_pos partial sums
                pltpu.VMEM((8, HW8), f32),   # giou-weighted distance
                pltpu.VMEM((8, HW8), f32),   # mask sum
            ],
        ),
        compiler_params=pltpu.CompilerParams(
            dimension_semantics=("parallel", "arbitrary", "arbitrary"),
            vmem_limit_bytes=vmem_limit),
    )(base8, hm_p, hm_g, wh_p, box, wmap)

    totals = jnp.sum(out[:, 0, :], axis=0)       # sum the per-split partials
    fsum = totals[0]      # pos_loss + neg_loss
    neg_s = totals[1]     # neg_loss
    n_pos = totals[2]     # num_pos
    giou_s = totals[3]    # sum((1 - giou) * weight)
    mask_s = totals[4]    # sum(weight)

    # ct_focal_loss final combination
    safe_npos = jnp.where(n_pos == 0, 1.0, n_pos)
    hm_loss = jnp.where(n_pos == 0, -neg_s, -fsum / safe_npos) * hm_weight

    # giou_loss final combination: avg_factor = mask.sum() + 1e-4
    wh_loss = (giou_s / (mask_s + 0.0001)) * wh_weight

    # matches torch: scalar hm_loss + (1,)-shaped wh_loss -> (1,)
    return (hm_loss + wh_loss)[None]


def ttf_loss_ref(pred_hm, pred_wh, heatmap, box_target, wh_w,
                 down_ratio=4, wh_weight=5.0, hm_weight=1.0):
    """Pure-JAX reference mirroring the PyTorch code."""
    B, C, H, W = pred_hm.shape
    p = jnp.clip(jax.nn.sigmoid(pred_hm), 1e-4, 1 - 1e-4)
    pos_inds = (heatmap == 1.0).astype(jnp.float32)
    neg_inds = (heatmap < 1.0).astype(jnp.float32)
    neg_w = (1 - heatmap) ** 4
    pos_loss = jnp.sum(jnp.log(p) * (1 - p) ** 2 * pos_inds)
    neg_loss = jnp.sum(jnp.log(1 - p) * p ** 2 * neg_w * neg_inds)
    num_pos = jnp.sum(pos_inds)
    hm_loss = jnp.where(num_pos == 0, -neg_loss,
                        -(pos_loss + neg_loss) / jnp.where(num_pos == 0, 1.0, num_pos)) * hm_weight

    mask = wh_w.reshape(-1, H, W)
    avg_factor = jnp.sum(mask) + 0.0001
    sx = jnp.arange(0, (W - 1) * down_ratio + 1, down_ratio, dtype=jnp.float32)
    sy = jnp.arange(0, (H - 1) * down_ratio + 1, down_ratio, dtype=jnp.float32)
    syy, sxx = jnp.meshgrid(sy, sx, indexing="ij")
    base = jnp.stack((sxx, syy), 0)
    pred_boxes = jnp.concatenate((base[None] - pred_wh[:, :2],
                                  base[None] + pred_wh[:, 2:]), axis=1).transpose(0, 2, 3, 1)
    boxes = box_target.transpose(0, 2, 3, 1)

    b1, b2 = pred_boxes, boxes
    lt = jnp.maximum(b1[..., :2], b2[..., :2])
    rb = jnp.minimum(b1[..., 2:], b2[..., 2:])
    wh = jnp.maximum(rb - lt + 1, 0)
    e1 = jnp.minimum(b1[..., :2], b2[..., :2])
    e2 = jnp.maximum(b1[..., 2:], b2[..., 2:])
    ewh = jnp.maximum(e2 - e1 + 1, 0)
    overlap = wh[..., 0] * wh[..., 1]
    ap = (b1[..., 2] - b1[..., 0] + 1) * (b1[..., 3] - b1[..., 1] + 1)
    ag = (b2[..., 2] - b2[..., 0] + 1) * (b2[..., 3] - b2[..., 1] + 1)
    u = ap + ag - overlap
    pos = mask > 0
    u_safe = jnp.where(pos, u, 1.0)
    enc = ewh[..., 0] * ewh[..., 1]
    enc_safe = jnp.where(pos, enc, 1.0)
    ious = overlap / u_safe
    gious = ious - (enc_safe - u_safe) / enc_safe
    dist = 1 - gious
    giou_sum = jnp.sum(jnp.where(pos, dist * mask, 0.0))
    wh_loss = giou_sum / avg_factor * wh_weight
    return (hm_loss + wh_loss)[None]


if __name__ == "__main__":
    key = jax.random.PRNGKey(0)
    B, C, H, W = 2, 8, 16, 16

    k1, k2, k3, k4, k5, k6, k7, k8 = jax.random.split(key, 8)

    pred_heatmap = jax.random.normal(k1, (B, C, H, W), jnp.float32)            # logits
    heatmap = jax.random.uniform(k2, (B, C, H, W), jnp.float32, 0.0, 0.99)     # gaussians in [0,1)
    heatmap = heatmap.at[:, :, 4, 4].set(1.0)                                  # exact peaks
    heatmap = heatmap.at[:, :, 10, 7].set(1.0)

    pred_wh = jax.random.uniform(k3, (B, 4, H, W), jnp.float32, 0.0, 8.0)

    x1 = jax.random.uniform(k4, (B, 1, H, W), jnp.float32, 0.0, 30.0)
    y1 = jax.random.uniform(k5, (B, 1, H, W), jnp.float32, 0.0, 30.0)
    x2 = x1 + jax.random.uniform(k6, (B, 1, H, W), jnp.float32, 1.0, 20.0)
    y2 = y1 + jax.random.uniform(k7, (B, 1, H, W), jnp.float32, 1.0, 20.0)
    gt_bboxes = jnp.concatenate([x1, y1, x2, y2], axis=1)                      # (B,4,H,W)

    u = jax.random.uniform(k8, (B, 1, H, W), jnp.float32)
    wh_weight_map = jnp.where(u > 0.6, u, 0.0)                                 # sparse positive weights

    out = ttf_loss(pred_heatmap, pred_wh, heatmap, gt_bboxes, wh_weight_map)
    out = jax.block_until_ready(out)

    ref = ttf_loss_ref(pred_heatmap, pred_wh, heatmap, gt_bboxes, wh_weight_map)
    ref = jax.block_until_ready(ref)

    np.testing.assert_allclose(np.asarray(out), np.asarray(ref), rtol=1e-4, atol=1e-4)
    print("KERNEL_OK")
</pallas_src>

<mosaic_0001>
module attributes {stable_mosaic.version = 11 : i64} {
  func.func @_ttf_loss_kernel(%arg0: i32, %arg1: i32, %arg2: i32, %arg3: memref<2x8x32xf32, #tpu.memory_space<vmem>>, %arg4: memref<1x8x256xf32, #tpu.memory_space<vmem>>, %arg5: memref<1x8x256xf32, #tpu.memory_space<vmem>>, %arg6: memref<1x4x8x32xf32, #tpu.memory_space<vmem>>, %arg7: memref<1x4x8x32xf32, #tpu.memory_space<vmem>>, %arg8: memref<1x1x8x32xf32, #tpu.memory_space<vmem>>, %arg9: memref<1x1x128xf32, #tpu.memory_space<vmem>>, %arg10: memref<8x256xf32, #tpu.memory_space<vmem>>, %arg11: memref<8x256xf32, #tpu.memory_space<vmem>>, %arg12: memref<8x256xf32, #tpu.memory_space<vmem>>, %arg13: memref<8x32xf32, #tpu.memory_space<vmem>>, %arg14: memref<8x32xf32, #tpu.memory_space<vmem>>) attributes {dimension_semantics = [#tpu.dimension_semantics<parallel>, #tpu.dimension_semantics<arbitrary>, #tpu.dimension_semantics<arbitrary>], iteration_bounds = array<i64: 2, 1, 1>, scalar_prefetch = 0 : i64, scratch_operands = 5 : i64, tpu.core_type = #tpu.core_type<tc>, window_params = [{pipeline_mode = #tpu.pipeline_mode<synchronous>, transform_indices = @transform_0, window_bounds = array<i64: 2, 8, 32>}, {transform_indices = @transform_1, window_bounds = array<i64: 1, 8, 256>}, {transform_indices = @transform_2, window_bounds = array<i64: 1, 8, 256>}, {transform_indices = @transform_3, window_bounds = array<i64: 1, 4, 8, 32>}, {transform_indices = @transform_4, window_bounds = array<i64: 1, 4, 8, 32>}, {transform_indices = @transform_5, window_bounds = array<i64: 1, 1, 8, 32>}, {transform_indices = @transform_6, window_bounds = array<i64: 1, 1, 128>}]} {
    %c0_i32 = arith.constant 0 : i32
    %0 = arith.cmpi eq, %arg1, %c0_i32 : i32
    %c0_i32_0 = arith.constant 0 : i32
    %1 = arith.cmpi eq, %arg2, %c0_i32_0 : i32
    %2 = arith.andi %0, %1 : i1
    %3 = arith.extui %2 : i1 to i32
    %c0_i32_1 = arith.constant 0 : i32
    %4 = arith.cmpi ne, %3, %c0_i32_1 : i32
    scf.if %4 {
      %cst_39 = arith.constant 0.000000e+00 : f32
      %74 = vector.broadcast %cst_39 : f32 to vector<8x256xf32>
      %c0_40 = arith.constant 0 : index
      %c0_41 = arith.constant 0 : index
      %75 = vector.load %arg10[%c0_40, %c0_41] : memref<8x256xf32, #tpu.memory_space<vmem>>, vector<8x256xf32>
      tpu.vector_store %arg10[%c0_40, %c0_41], %74 {strides = array<i32>} : memref<8x256xf32, #tpu.memory_space<vmem>>, vector<8x256xf32>,
      %cst_42 = arith.constant 0.000000e+00 : f32
      %76 = vector.broadcast %cst_42 : f32 to vector<8x256xf32>
      %c0_43 = arith.constant 0 : index
      %c0_44 = arith.constant 0 : index
      %77 = vector.load %arg11[%c0_43, %c0_44] : memref<8x256xf32, #tpu.memory_space<vmem>>, vector<8x256xf32>
      tpu.vector_store %arg11[%c0_43, %c0_44], %76 {strides = array<i32>} : memref<8x256xf32, #tpu.memory_space<vmem>>, vector<8x256xf32>,
      %cst_45 = arith.constant 0.000000e+00 : f32
      %78 = vector.broadcast %cst_45 : f32 to vector<8x256xf32>
      %c0_46 = arith.constant 0 : index
      %c0_47 = arith.constant 0 : index
      %79 = vector.load %arg12[%c0_46, %c0_47] : memref<8x256xf32, #tpu.memory_space<vmem>>, vector<8x256xf32>
      tpu.vector_store %arg12[%c0_46, %c0_47], %78 {strides = array<i32>} : memref<8x256xf32, #tpu.memory_space<vmem>>, vector<8x256xf32>,
      %cst_48 = arith.constant 0.000000e+00 : f32
      %80 = vector.broadcast %cst_48 : f32 to vector<8x32xf32>
      %c0_49 = arith.constant 0 : index
      %c0_50 = arith.constant 0 : index
      %81 = vector.load %arg13[%c0_49, %c0_50] : memref<8x32xf32, #tpu.memory_space<vmem>>, vector<8x32xf32>
      tpu.vector_store %arg13[%c0_49, %c0_50], %80 {strides = array<i32>} : memref<8x32xf32, #tpu.memory_space<vmem>>, vector<8x32xf32>,
      %cst_51 = arith.constant 0.000000e+00 : f32
      %82 = vector.broadcast %cst_51 : f32 to vector<8x32xf32>
      %c0_52 = arith.constant 0 : index
      %c0_53 = arith.constant 0 : index
      %83 = vector.load %arg14[%c0_52, %c0_53] : memref<8x32xf32, #tpu.memory_space<vmem>>, vector<8x32xf32>
      tpu.vector_store %arg14[%c0_52, %c0_53], %82 {strides = array<i32>} : memref<8x32xf32, #tpu.memory_space<vmem>>, vector<8x32xf32>,
    } else {
    }
    %c0 = arith.constant 0 : index
    %c0_2 = arith.constant 0 : index
    %c0_3 = arith.constant 0 : index
    %5 = vector.load %arg4[%c0, %c0_2, %c0_3] : memref<1x8x256xf32, #tpu.memory_space<vmem>>, vector<1x8x256xf32>
    %6 = vector.shape_cast %5 : vector<1x8x256xf32> to vector<8x256xf32>
    %c0_4 = arith.constant 0 : index
    %c0_5 = arith.constant 0 : index
    %c0_6 = arith.constant 0 : index
    %7 = vector.load %arg5[%c0_4, %c0_5, %c0_6] : memref<1x8x256xf32, #tpu.memory_space<vmem>>, vector<1x8x256xf32>
    %8 = vector.shape_cast %7 : vector<1x8x256xf32> to vector<8x256xf32>
    %cst = arith.constant 0.000000e+00 : f32
    %9 = vector.broadcast %cst : f32 to vector<8x256xf32>
    %10 = arith.subf %9, %6 : vector<8x256xf32>
    %11 = math.exp %10 : vector<8x256xf32>
    %cst_7 = arith.constant 1.000000e+00 : f32
    %12 = vector.broadcast %cst_7 : f32 to vector<8x256xf32>
    %13 = arith.addf %12, %11 : vector<8x256xf32>
    %cst_8 = arith.constant 1.000000e+00 : f32
    %14 = vector.broadcast %cst_8 : f32 to vector<8x256xf32>
    %15 = arith.divf %14, %13 : vector<8x256xf32>
    %cst_9 = arith.constant 9.99999974E-5 : f32
    %cst_10 = arith.constant 0.999899983 : f32
    %16 = vector.broadcast %cst_9 : f32 to vector<8x256xf32>
    %17 = arith.maximumf %16, %15 : vector<8x256xf32>
    %18 = vector.broadcast %cst_10 : f32 to vector<8x256xf32>
    %19 = arith.minimumf %18, %17 : vector<8x256xf32>
    %cst_11 = arith.constant 1.000000e+00 : f32
    %20 = vector.broadcast %cst_11 : f32 to vector<8x256xf32>
    %21 = arith.addf %20, %11 : vector<8x256xf32>
    %22 = math.log %21 : vector<8x256xf32>
    %cst_12 = arith.constant 0.000000e+00 : f32
    %23 = vector.broadcast %cst_12 : f32 to vector<8x256xf32>
    %24 = arith.subf %23, %22 : vector<8x256xf32>
    %cst_13 = arith.constant -9.21034049 : f32
    %cst_14 = arith.constant -1.000050e-04 : f32
    %25 = vector.broadcast %cst_13 : f32 to vector<8x256xf32>
    %26 = arith.maximumf %25, %24 : vector<8x256xf32>
    %27 = vector.broadcast %cst_14 : f32 to vector<8x256xf32>
    %28 = arith.minimumf %27, %26 : vector<8x256xf32>
    %cst_15 = arith.constant 0.000000e+00 : f32
    %29 = vector.broadcast %cst_15 : f32 to vector<8x256xf32>
    %30 = arith.subf %29, %6 : vector<8x256xf32>
    %31 = arith.subf %30, %22 : vector<8x256xf32>
    %cst_16 = arith.constant -9.21034049 : f32
    %cst_17 = arith.constant -1.000050e-04 : f32
    %32 = vector.broadcast %cst_16 : f32 to vector<8x256xf32>
    %33 = arith.maximumf %32, %31 : vector<8x256xf32>
    %34 = vector.broadcast %cst_17 : f32 to vector<8x256xf32>
    %35 = arith.minimumf %34, %33 : vector<8x256xf32>
    %cst_18 = arith.constant 1.000000e+00 : f32
    %36 = vector.broadcast %cst_18 : f32 to vector<8x256xf32>
    %37 = arith.cmpf oeq, %8, %36 : vector<8x256xf32>
    %38 = arith.extui %37 : vector<8x256xi1> to vector<8x256xi32>
    %39 = arith.sitofp %38 : vector<8x256xi32> to vector<8x256xf32>
    %cst_19 = arith.constant 1.000000e+00 : f32
    %40 = vector.broadcast %cst_19 : f32 to vector<8x256xf32>
    %41 = arith.cmpf olt, %8, %40 : vector<8x256xf32>
    %42 = arith.extui %41 : vector<8x256xi1> to vector<8x256xi32>
    %43 = arith.sitofp %42 : vector<8x256xi32> to vector<8x256xf32>
    %cst_20 = arith.constant 1.000000e+00 : f32
    %44 = vector.broadcast %cst_20 : f32 to vector<8x256xf32>
    %45 = arith.subf %44, %8 : vector<8x256xf32>
    %46 = arith.mulf %45, %45 : vector<8x256xf32>
    %47 = arith.mulf %46, %46 : vector<8x256xf32>
    %cst_21 = arith.constant 1.000000e+00 : f32
    %48 = vector.broadcast %cst_21 : f32 to vector<8x256xf32>
    %49 = arith.subf %48, %19 : vector<8x256xf32>
    %50 = arith.mulf %49, %49 : vector<8x256xf32>
    %51 = arith.mulf %28, %50 : vector<8x256xf32>
    %52 = arith.mulf %51, %39 : vector<8x256xf32>
    %53 = arith.mulf %19, %19 : vector<8x256xf32>
    %54 = arith.mulf %35, %53 : vector<8x256xf32>
    %55 = arith.mulf %54, %47 : vector<8x256xf32>
    %56 = arith.mulf %55, %43 : vector<8x256xf32>
    %c0_22 = arith.constant 0 : index
    %c0_23 = arith.constant 0 : index
    %57 = vector.load %arg10[%c0_22, %c0_23] : memref<8x256xf32, #tpu.memory_space<vmem>>, vector<8x256xf32>
    %58 = arith.addf %57, %52 : vector<8x256xf32>
    %c0_24 = arith.constant 0 : index
    %c0_25 = arith.constant 0 : index
    %59 = vector.load %arg10[%c0_24, %c0_25] : memref<8x256xf32, #tpu.memory_space<vmem>>, vector<8x256xf32>
    tpu.vector_store %arg10[%c0_24, %c0_25], %58 {strides = array<i32>} : memref<8x256xf32, #tpu.memory_space<vmem>>, vector<8x256xf32>,
    %c0_26 = arith.constant 0 : index
    %c0_27 = arith.constant 0 : index
    %60 = vector.load %arg11[%c0_26, %c0_27] : memref<8x256xf32, #tpu.memory_space<vmem>>, vector<8x256xf32>
    %61 = arith.addf %60, %56 : vector<8x256xf32>
    %c0_28 = arith.constant 0 : index
    %c0_29 = arith.constant 0 : index
    %62 = vector.load %arg11[%c0_28, %c0_29] : memref<8x256xf32, #tpu.memory_space<vmem>>, vector<8x256xf32>
    tpu.vector_store %arg11[%c0_28, %c0_29], %61 {strides = array<i32>} : memref<8x256xf32, #tpu.memory_space<vmem>>, vector<8x256xf32>,
    %c0_30 = arith.constant 0 : index
    %c0_31 = arith.constant 0 : index
    %63 = vector.load %arg12[%c0_30, %c0_31] : memref<8x256xf32, #tpu.memory_space<vmem>>, vector<8x256xf32>
    %64 = arith.addf %63, %39 : vector<8x256xf32>
    %c0_32 = arith.constant 0 : index
    %c0_33 = arith.constant 0 : index
    %65 = vector.load %arg12[%c0_32, %c0_33] : memref<8x256xf32, #tpu.memory_space<vmem>>, vector<8x256xf32>
    tpu.vector_store %arg12[%c0_32, %c0_33], %64 {strides = array<i32>} : memref<8x256xf32, #tpu.memory_space<vmem>>, vector<8x256xf32>,
    %c0_i32_34 = arith.constant 0 : i32
    %66 = arith.cmpi eq, %arg2, %c0_i32_34 : i32
    %67 = arith.extui %66 : i1 to i32
    %c0_i32_35 = arith.constant 0 : i32
    %68 = arith.cmpi ne, %67, %c0_i32_35 : i32
    scf.if %68 {
      %c0_39 = arith.constant 0 : index
      %c0_40 = arith.constant 0 : index
      %c0_41 = arith.constant 0 : index
      %74 = vector.load %arg3[%c0_39, %c0_40, %c0_41] : memref<2x8x32xf32, #tpu.memory_space<vmem>>, vector<1x8x32xf32>
      %75 = vector.shape_cast %74 : vector<1x8x32xf32> to vector<8x32xf32>
      %c1 = arith.constant 1 : index
      %c0_42 = arith.constant 0 : index
      %c0_43 = arith.constant 0 : index
      %76 = vector.load %arg3[%c1, %c0_42, %c0_43] : memref<2x8x32xf32, #tpu.memory_space<vmem>>, vector<1x8x32xf32>
      %77 = vector.shape_cast %76 : vector<1x8x32xf32> to vector<8x32xf32>
      %c0_44 = arith.constant 0 : index
      %c0_45 = arith.constant 0 : index
      %c0_46 = arith.constant 0 : index
      %c0_47 = arith.constant 0 : index
      %78 = vector.load %arg6[%c0_44, %c0_45, %c0_46, %c0_47] : memref<1x4x8x32xf32, #tpu.memory_space<vmem>>, vector<1x1x8x32xf32>
      %79 = vector.shape_cast %78 : vector<1x1x8x32xf32> to vector<8x32xf32>
      %80 = arith.subf %75, %79 : vector<8x32xf32>
      %c0_48 = arith.constant 0 : index
      %c1_49 = arith.constant 1 : index
      %c0_50 = arith.constant 0 : index
      %c0_51 = arith.constant 0 : index
      %81 = vector.load %arg6[%c0_48, %c1_49, %c0_50, %c0_51] : memref<1x4x8x32xf32, #tpu.memory_space<vmem>>, vector<1x1x8x32xf32>
      %82 = vector.shape_cast %81 : vector<1x1x8x32xf32> to vector<8x32xf32>
      %83 = arith.subf %77, %82 : vector<8x32xf32>
      %c0_52 = arith.constant 0 : index
      %c2 = arith.constant 2 : index
      %c0_53 = arith.constant 0 : index
      %c0_54 = arith.constant 0 : index
      %84 = vector.load %arg6[%c0_52, %c2, %c0_53, %c0_54] : memref<1x4x8x32xf32, #tpu.memory_space<vmem>>, vector<1x1x8x32xf32>
      %85 = vector.shape_cast %84 : vector<1x1x8x32xf32> to vector<8x32xf32>
      %86 = arith.addf %75, %85 : vector<8x32xf32>
      %c0_55 = arith.constant 0 : index
      %c3 = arith.constant 3 : index
      %c0_56 = arith.constant 0 : index
      %c0_57 = arith.constant 0 : index
      %87 = vector.load %arg6[%c0_55, %c3, %c0_56, %c0_57] : memref<1x4x8x32xf32, #tpu.memory_space<vmem>>, vector<1x1x8x32xf32>
      %88 = vector.shape_cast %87 : vector<1x1x8x32xf32> to vector<8x32xf32>
      %89 = arith.addf %77, %88 : vector<8x32xf32>
      %c0_58 = arith.constant 0 : index
      %c0_59 = arith.constant 0 : index
      %c0_60 = arith.constant 0 : index
      %c0_61 = arith.constant 0 : index
      %90 = vector.load %arg7[%c0_58, %c0_59, %c0_60, %c0_61] : memref<1x4x8x32xf32, #tpu.memory_space<vmem>>, vector<1x1x8x32xf32>
      %91 = vector.shape_cast %90 : vector<1x1x8x32xf32> to vector<8x32xf32>
      %c0_62 = arith.constant 0 : index
      %c1_63 = arith.constant 1 : index
      %c0_64 = arith.constant 0 : index
      %c0_65 = arith.constant 0 : index
      %92 = vector.load %arg7[%c0_62, %c1_63, %c0_64, %c0_65] : memref<1x4x8x32xf32, #tpu.memory_space<vmem>>, vector<1x1x8x32xf32>
      %93 = vector.shape_cast %92 : vector<1x1x8x32xf32> to vector<8x32xf32>
      %c0_66 = arith.constant 0 : index
      %c2_67 = arith.constant 2 : index
      %c0_68 = arith.constant 0 : index
      %c0_69 = arith.constant 0 : index
      %94 = vector.load %arg7[%c0_66, %c2_67, %c0_68, %c0_69] : memref<1x4x8x32xf32, #tpu.memory_space<vmem>>, vector<1x1x8x32xf32>
      %95 = vector.shape_cast %94 : vector<1x1x8x32xf32> to vector<8x32xf32>
      %c0_70 = arith.constant 0 : index
      %c3_71 = arith.constant 3 : index
      %c0_72 = arith.constant 0 : index
      %c0_73 = arith.constant 0 : index
      %96 = vector.load %arg7[%c0_70, %c3_71, %c0_72, %c0_73] : memref<1x4x8x32xf32, #tpu.memory_space<vmem>>, vector<1x1x8x32xf32>
      %97 = vector.shape_cast %96 : vector<1x1x8x32xf32> to vector<8x32xf32>
      %c0_74 = arith.constant 0 : index
      %c0_75 = arith.constant 0 : index
      %c0_76 = arith.constant 0 : index
      %c0_77 = arith.constant 0 : index
      %98 = vector.load %arg8[%c0_74, %c0_75, %c0_76, %c0_77] : memref<1x1x8x32xf32, #tpu.memory_space<vmem>>, vector<1x1x8x32xf32>
      %99 = vector.shape_cast %98 : vector<1x1x8x32xf32> to vector<8x32xf32>
      %100 = arith.minimumf %86, %95 : vector<8x32xf32>
      %101 = arith.maximumf %80, %91 : vector<8x32xf32>
      %102 = arith.subf %100, %101 : vector<8x32xf32>
      %cst_78 = arith.constant 1.000000e+00 : f32
      %103 = vector.broadcast %cst_78 : f32 to vector<8x32xf32>
      %104 = arith.addf %102, %103 : vector<8x32xf32>
      %cst_79 = arith.constant 0.000000e+00 : f32
      %105 = vector.broadcast %cst_79 : f32 to vector<8x32xf32>
      %106 = arith.maximumf %104, %105 : vector<8x32xf32>
      %107 = arith.minimumf %89, %97 : vector<8x32xf32>
      %108 = arith.maximumf %83, %93 : vector<8x32xf32>
      %109 = arith.subf %107, %108 : vector<8x32xf32>
      %cst_80 = arith.constant 1.000000e+00 : f32
      %110 = vector.broadcast %cst_80 : f32 to vector<8x32xf32>
      %111 = arith.addf %109, %110 : vector<8x32xf32>
      %cst_81 = arith.constant 0.000000e+00 : f32
      %112 = vector.broadcast %cst_81 : f32 to vector<8x32xf32>
      %113 = arith.maximumf %111, %112 : vector<8x32xf32>
      %114 = arith.mulf %106, %113 : vector<8x32xf32>
      %115 = arith.subf %86, %80 : vector<8x32xf32>
      %cst_82 = arith.constant 1.000000e+00 : f32
      %116 = vector.broadcast %cst_82 : f32 to vector<8x32xf32>
      %117 = arith.addf %115, %116 : vector<8x32xf32>
      %118 = arith.subf %89, %83 : vector<8x32xf32>
      %cst_83 = arith.constant 1.000000e+00 : f32
      %119 = vector.broadcast %cst_83 : f32 to vector<8x32xf32>
      %120 = arith.addf %118, %119 : vector<8x32xf32>
      %121 = arith.mulf %117, %120 : vector<8x32xf32>
      %122 = arith.subf %95, %91 : vector<8x32xf32>
      %cst_84 = arith.constant 1.000000e+00 : f32
      %123 = vector.broadcast %cst_84 : f32 to vector<8x32xf32>
      %124 = arith.addf %122, %123 : vector<8x32xf32>
      %125 = arith.subf %97, %93 : vector<8x32xf32>
      %cst_85 = arith.constant 1.000000e+00 : f32
      %126 = vector.broadcast %cst_85 : f32 to vector<8x32xf32>
      %127 = arith.addf %125, %126 : vector<8x32xf32>
      %128 = arith.mulf %124, %127 : vector<8x32xf32>
      %129 = arith.addf %121, %128 : vector<8x32xf32>
      %130 = arith.subf %129, %114 : vector<8x32xf32>
      %131 = arith.maximumf %86, %95 : vector<8x32xf32>
      %132 = arith.minimumf %80, %91 : vector<8x32xf32>
      %133 = arith.subf %131, %132 : vector<8x32xf32>
      %cst_86 = arith.constant 1.000000e+00 : f32
      %134 = vector.broadcast %cst_86 : f32 to vector<8x32xf32>
      %135 = arith.addf %133, %134 : vector<8x32xf32>
      %cst_87 = arith.constant 0.000000e+00 : f32
      %136 = vector.broadcast %cst_87 : f32 to vector<8x32xf32>
      %137 = arith.maximumf %135, %136 : vector<8x32xf32>
      %138 = arith.maximumf %89, %97 : vector<8x32xf32>
      %139 = arith.minimumf %83, %93 : vector<8x32xf32>
      %140 = arith.subf %138, %139 : vector<8x32xf32>
      %cst_88 = arith.constant 1.000000e+00 : f32
      %141 = vector.broadcast %cst_88 : f32 to vector<8x32xf32>
      %142 = arith.addf %140, %141 : vector<8x32xf32>
      %cst_89 = arith.constant 0.000000e+00 : f32
      %143 = vector.broadcast %cst_89 : f32 to vector<8x32xf32>
      %144 = arith.maximumf %142, %143 : vector<8x32xf32>
      %145 = arith.mulf %137, %144 : vector<8x32xf32>
      %cst_90 = arith.constant 0.000000e+00 : f32
      %146 = vector.broadcast %cst_90 : f32 to vector<8x32xf32>
      %147 = arith.cmpf ogt, %99, %146 : vector<8x32xf32>
      %cst_91 = arith.constant 1.000000e+00 : f32
      %148 = vector.broadcast %cst_91 : f32 to vector<8x32xf32>
      %149 = arith.select %147, %130, %148 : vector<8x32xi1>, vector<8x32xf32>
      %cst_92 = arith.constant 1.000000e+00 : f32
      %150 = vector.broadcast %cst_92 : f32 to vector<8x32xf32>
      %151 = arith.select %147, %145, %150 : vector<8x32xi1>, vector<8x32xf32>
      %152 = arith.divf %114, %149 : vector<8x32xf32>
      %153 = arith.subf %151, %149 : vector<8x32xf32>
      %154 = arith.divf %153, %151 : vector<8x32xf32>
      %155 = arith.subf %152, %154 : vector<8x32xf32>
      %c0_93 = arith.constant 0 : index
      %c0_94 = arith.constant 0 : index
      %156 = vector.load %arg13[%c0_93, %c0_94] : memref<8x32xf32, #tpu.memory_space<vmem>>, vector<8x32xf32>
      %cst_95 = arith.constant 1.000000e+00 : f32
      %157 = vector.broadcast %cst_95 : f32 to vector<8x32xf32>
      %158 = arith.subf %157, %155 : vector<8x32xf32>
      %159 = arith.mulf %158, %99 : vector<8x32xf32>
      %cst_96 = arith.constant 0.000000e+00 : f32
      %160 = vector.broadcast %cst_96 : f32 to vector<8x32xf32>
      %161 = arith.select %147, %159, %160 : vector<8x32xi1>, vector<8x32xf32>
      %162 = arith.addf %156, %161 : vector<8x32xf32>
      %c0_97 = arith.constant 0 : index
      %c0_98 = arith.constant 0 : index
      %163 = vector.load %arg13[%c0_97, %c0_98] : memref<8x32xf32, #tpu.memory_space<vmem>>, vector<8x32xf32>
      tpu.vector_store %arg13[%c0_97, %c0_98], %162 {strides = array<i32>} : memref<8x32xf32, #tpu.memory_space<vmem>>, vector<8x32xf32>,
      %c0_99 = arith.constant 0 : index
      %c0_100 = arith.constant 0 : index
      %164 = vector.load %arg14[%c0_99, %c0_100] : memref<8x32xf32, #tpu.memory_space<vmem>>, vector<8x32xf32>
      %165 = arith.addf %164, %99 : vector<8x32xf32>
      %c0_101 = arith.constant 0 : index
      %c0_102 = arith.constant 0 : index
      %166 = vector.load %arg14[%c0_101, %c0_102] : memref<8x32xf32, #tpu.memory_space<vmem>>, vector<8x32xf32>
      tpu.vector_store %arg14[%c0_101, %c0_102], %165 {strides = array<i32>} : memref<8x32xf32, #tpu.memory_space<vmem>>, vector<8x32xf32>,
    } else {
    }
    %c0_i32_36 = arith.constant 0 : i32
    %69 = arith.cmpi eq, %arg1, %c0_i32_36 : i32
    %c0_i32_37 = arith.constant 0 : i32
    %70 = arith.cmpi eq, %arg2, %c0_i32_37 : i32
    %71 = arith.andi %69, %70 : i1
    %72 = arith.extui %71 : i1 to i32
    %c0_i32_38 = arith.constant 0 : i32
    %73 = arith.cmpi ne, %72, %c0_i32_38 : i32
    scf.if %73 {
      %c0_39 = arith.constant 0 : index
      %c0_40 = arith.constant 0 : index
      %74 = vector.load %arg10[%c0_39, %c0_40] : memref<8x256xf32, #tpu.memory_space<vmem>>, vector<8x256xf32>
      %75 = vector.shape_cast %74 : vector<8x256xf32> to vector<1x8x256xf32>
      %cst_41 = arith.constant dense<0.000000e+00> : vector<1xf32>
      %76 = vector.multi_reduction <add>, %75, %cst_41 [1, 2] : vector<1x8x256xf32> to vector<1xf32>
      %77 = vector.shape_cast %76 : vector<1xf32> to vector<1x1x1xf32>
      %78 = vector.extract %77[0, 0, 0] : f32 from vector<1x1x1xf32>
      %c0_42 = arith.constant 0 : index
      %c0_43 = arith.constant 0 : index
      %79 = vector.load %arg11[%c0_42, %c0_43] : memref<8x256xf32, #tpu.memory_space<vmem>>, vector<8x256xf32>
      %80 = vector.shape_cast %79 : vector<8x256xf32> to vector<1x8x256xf32>
      %cst_44 = arith.constant dense<0.000000e+00> : vector<1xf32>
      %81 = vector.multi_reduction <add>, %80, %cst_44 [1, 2] : vector<1x8x256xf32> to vector<1xf32>
      %82 = vector.shape_cast %81 : vector<1xf32> to vector<1x1x1xf32>
      %83 = vector.extract %82[0, 0, 0] : f32 from vector<1x1x1xf32>
      %c0_45 = arith.constant 0 : index
      %c0_46 = arith.constant 0 : index
      %84 = vector.load %arg12[%c0_45, %c0_46] : memref<8x256xf32, #tpu.memory_space<vmem>>, vector<8x256xf32>
      %85 = vector.shape_cast %84 : vector<8x256xf32> to vector<1x8x256xf32>
      %cst_47 = arith.constant dense<0.000000e+00> : vector<1xf32>
      %86 = vector.multi_reduction <add>, %85, %cst_47 [1, 2] : vector<1x8x256xf32> to vector<1xf32>
      %87 = vector.shape_cast %86 : vector<1xf32> to vector<1x1x1xf32>
      %88 = vector.extract %87[0, 0, 0] : f32 from vector<1x1x1xf32>
      %c0_48 = arith.constant 0 : index
      %c0_49 = arith.constant 0 : index
      %89 = vector.load %arg13[%c0_48, %c0_49] : memref<8x32xf32, #tpu.memory_space<vmem>>, vector<8x32xf32>
      %90 = vector.shape_cast %89 : vector<8x32xf32> to vector<1x8x32xf32>
      %cst_50 = arith.constant dense<0.000000e+00> : vector<1xf32>
      %91 = vector.multi_reduction <add>, %90, %cst_50 [1, 2] : vector<1x8x32xf32> to vector<1xf32>
      %92 = vector.shape_cast %91 : vector<1xf32> to vector<1x1x1xf32>
      %93 = vector.extract %92[0, 0, 0] : f32 from vector<1x1x1xf32>
      %c0_51 = arith.constant 0 : index
      %c0_52 = arith.constant 0 : index
      %94 = vector.load %arg14[%c0_51, %c0_52] : memref<8x32xf32, #tpu.memory_space<vmem>>, vector<8x32xf32>
      %95 = vector.shape_cast %94 : vector<8x32xf32> to vector<1x8x32xf32>
      %cst_53 = arith.constant dense<0.000000e+00> : vector<1xf32>
      %96 = vector.multi_reduction <add>, %95, %cst_53 [1, 2] : vector<1x8x32xf32> to vector<1xf32>
      %97 = vector.shape_cast %96 : vector<1xf32> to vector<1x1x1xf32>
      %98 = vector.extract %97[0, 0, 0] : f32 from vector<1x1x1xf32>
      %99 = tpu.iota {dimensions = array<i32: 1>} : vector<1x128xi32>
      %c0_i32_54 = arith.constant 0 : i32
      %100 = vector.broadcast %c0_i32_54 : i32 to vector<1x128xi32>
      %101 = arith.cmpi eq, %99, %100 : vector<1x128xi32>
      %102 = arith.addf %78, %83 : f32
      %cst_55 = arith.constant 0.000000e+00 : f32
      %103 = vector.broadcast %102 : f32 to vector<1x128xf32>
      %104 = vector.broadcast %cst_55 : f32 to vector<1x128xf32>
      %105 = arith.select %101, %103, %104 : vector<1x128xi1>, vector<1x128xf32>
      %c1_i32 = arith.constant 1 : i32
      %106 = vector.broadcast %c1_i32 : i32 to vector<1x128xi32>
      %107 = arith.cmpi eq, %99, %106 : vector<1x128xi32>
      %cst_56 = arith.constant 0.000000e+00 : f32
      %108 = vector.broadcast %83 : f32 to vector<1x128xf32>
      %109 = vector.broadcast %cst_56 : f32 to vector<1x128xf32>
      %110 = arith.select %107, %108, %109 : vector<1x128xi1>, vector<1x128xf32>
      %111 = arith.addf %105, %110 : vector<1x128xf32>
      %c2_i32 = arith.constant 2 : i32
      %112 = vector.broadcast %c2_i32 : i32 to vector<1x128xi32>
      %113 = arith.cmpi eq, %99, %112 : vector<1x128xi32>
      %cst_57 = arith.constant 0.000000e+00 : f32
      %114 = vector.broadcast %88 : f32 to vector<1x128xf32>
      %115 = vector.broadcast %cst_57 : f32 to vector<1x128xf32>
      %116 = arith.select %113, %114, %115 : vector<1x128xi1>, vector<1x128xf32>
      %117 = arith.addf %111, %116 : vector<1x128xf32>
      %c3_i32 = arith.constant 3 : i32
      %118 = vector.broadcast %c3_i32 : i32 to vector<1x128xi32>
      %119 = arith.cmpi eq, %99, %118 : vector<1x128xi32>
      %cst_58 = arith.constant 0.000000e+00 : f32
      %120 = vector.broadcast %93 : f32 to vector<1x128xf32>
      %121 = vector.broadcast %cst_58 : f32 to vector<1x128xf32>
      %122 = arith.select %119, %120, %121 : vector<1x128xi1>, vector<1x128xf32>
      %123 = arith.addf %117, %122 : vector<1x128xf32>
      %c4_i32 = arith.constant 4 : i32
      %124 = vector.broadcast %c4_i32 : i32 to vector<1x128xi32>
      %125 = arith.cmpi eq, %99, %124 : vector<1x128xi32>
      %cst_59 = arith.constant 0.000000e+00 : f32
      %126 = vector.broadcast %98 : f32 to vector<1x128xf32>
      %127 = vector.broadcast %cst_59 : f32 to vector<1x128xf32>
      %128 = arith.select %125, %126, %127 : vector<1x128xi1>, vector<1x128xf32>
      %129 = arith.addf %123, %128 : vector<1x128xf32>
      %c0_60 = arith.constant 0 : index
      %c0_61 = arith.constant 0 : index
      %c0_62 = arith.constant 0 : index
      %130 = vector.load %arg9[%c0_60, %c0_61, %c0_62] : memref<1x1x128xf32, #tpu.memory_space<vmem>>, vector<1x1x128xf32>
      %131 = vector.shape_cast %130 : vector<1x1x128xf32> to vector<1x128xf32>
      %132 = vector.shape_cast %129 : vector<1x128xf32> to vector<1x1x128xf32>
      tpu.vector_store %arg9[%c0_60, %c0_61, %c0_62], %132 {strides = array<i32>} : memref<1x1x128xf32, #tpu.memory_space<vmem>>, vector<1x1x128xf32>,
    } else {
    }
    return
  }
  func.func @transform_0(%arg0: i32, %arg1: i32, %arg2: i32) -> (i32, i32, i32) {
    %c0_i32 = arith.constant 0 : i32
    %c0_i32_0 = arith.constant 0 : i32
    %c0_i32_1 = arith.constant 0 : i32
    %c0_i32_2 = arith.constant 0 : i32
    return %c0_i32, %c0_i32_0, %c0_i32_1 : i32, i32, i32
  }
  func.func @transform_1(%arg0: i32, %arg1: i32, %arg2: i32) -> (i32, i32, i32) {
    %c1_i32 = arith.constant 1 : i32
    %0 = arith.muli %arg0, %c1_i32 : i32
    %1 = arith.addi %0, %arg1 : i32
    %c0_i32 = arith.constant 0 : i32
    %c0_i32_0 = arith.constant 0 : i32
    return %1, %arg2, %c0_i32 : i32, i32, i32
  }
  func.func @transform_2(%arg0: i32, %arg1: i32, %arg2: i32) -> (i32, i32, i32) {
    %c1_i32 = arith.constant 1 : i32
    %0 = arith.muli %arg0, %c1_i32 : i32
    %1 = arith.addi %0, %arg1 : i32
    %c0_i32 = arith.constant 0 : i32
    %c0_i32_0 = arith.constant 0 : i32
    return %1, %arg2, %c0_i32 : i32, i32, i32
  }
  func.func @transform_3(%arg0: i32, %arg1: i32, %arg2: i32) -> (i32, i32, i32, i32) {
    %c1_i32 = arith.constant 1 : i32
    %0 = arith.muli %arg0, %c1_i32 : i32
    %1 = arith.addi %0, %arg1 : i32
    %c0_i32 = arith.constant 0 : i32
    %c0_i32_0 = arith.constant 0 : i32
    %c0_i32_1 = arith.constant 0 : i32
    %c0_i32_2 = arith.constant 0 : i32
    return %1, %c0_i32, %c0_i32_0, %c0_i32_1 : i32, i32, i32, i32
  }
  func.func @transform_4(%arg0: i32, %arg1: i32, %arg2: i32) -> (i32, i32, i32, i32) {
    %c1_i32 = arith.constant 1 : i32
    %0 = arith.muli %arg0, %c1_i32 : i32
    %1 = arith.addi %0, %arg1 : i32
    %c0_i32 = arith.constant 0 : i32
    %c0_i32_0 = arith.constant 0 : i32
    %c0_i32_1 = arith.constant 0 : i32
    %c0_i32_2 = arith.constant 0 : i32
    return %1, %c0_i32, %c0_i32_0, %c0_i32_1 : i32, i32, i32, i32
  }
  func.func @transform_5(%arg0: i32, %arg1: i32, %arg2: i32) -> (i32, i32, i32, i32) {
    %c1_i32 = arith.constant 1 : i32
    %0 = arith.muli %arg0, %c1_i32 : i32
    %1 = arith.addi %0, %arg1 : i32
    %c0_i32 = arith.constant 0 : i32
    %c0_i32_0 = arith.constant 0 : i32
    %c0_i32_1 = arith.constant 0 : i32
    %c0_i32_2 = arith.constant 0 : i32
    return %1, %c0_i32, %c0_i32_0, %c0_i32_1 : i32, i32, i32, i32
  }
  func.func @transform_6(%arg0: i32, %arg1: i32, %arg2: i32) -> (i32, i32, i32) {
    %c0_i32 = arith.constant 0 : i32
    %c0_i32_0 = arith.constant 0 : i32
    %c0_i32_1 = arith.constant 0 : i32
    return %arg0, %c0_i32, %c0_i32_0 : i32, i32, i32
  }
}

</mosaic_0001>

<bundles_post_ra>
// kernel: tpu_custom_call.1
= control target key start
LH: loop header
LB: loop body
LE: loop exit
PB: predicated region body
PF: predicated region fallthrough
CT: control target
= control target key end

     0   :  { %s1743_s0 = inlined_call_operand.hbm [shape: f32[2,8,32], index: 0, kind: input, shape index: {}]   ;;  %s1744_s1 = inlined_call_operand.hbm [shape: f32[2,8,256], index: 1, kind: input, shape index: {}]   ;;  %s1745_s2 = inlined_call_operand.hbm [shape: f32[2,8,256], index: 2, kind: input, shape index: {}]   ;;  %s1746_s3 = inlined_call_operand.hbm [shape: f32[2,4,8,32], index: 3, kind: input, shape index: {}]   ;;  %s1747_s4 = inlined_call_operand.hbm [shape: f32[2,4,8,32], index: 4, kind: input, shape index: {}]   ;;  %s1748_s5 = inlined_call_operand.hbm [shape: f32[2,1,8,32], index: 5, kind: input, shape index: {}]   ;;  %s1749_s6 = inlined_call_operand.hbm [shape: f32[2,1,128], index: 6, kind: output, shape index: {}]  }
   0x1   :  { %1760 = sst [smem:[#allocation26_spill]] %s1744_s1 }
   0x2   :  { %1761 = sst [smem:[#allocation27_spill]] %s1745_s2 }
   0x3   :  { %1762 = sst [smem:[#allocation28_spill]] %s1746_s3 }
   0x4   :  { %1763 = sst [smem:[#allocation29_spill]] %s1747_s4 }
   0x5   :  { %1764 = sst [smem:[#allocation30_spill]] %s1749_s6 }
   0x6   :  { %11 = vsyncpa [#allocation8], 0 }
   0x7   :  { %12 = vsyncpa [#allocation11], 0 }
   0x8   :  { %14 = vsyncpa [#allocation11 + $0x1], 0 }
   0x9   :  { %15 = vsyncpa [#allocation14], 0 }
   0xa   :  { %17 = vsyncpa [#allocation14 + $0x1], 0 }
   0xb   :  { %18 = vsyncpa [#allocation17], 0 }
   0xc   :  { %20 = vsyncpa [#allocation17 + $0x1], 0 }
   0xd   :  { %21 = vsyncpa [#allocation9], 0 }
   0xe   :  { %23 = vsyncpa [#allocation9 + $0x1], 0  ;;  %s1412_s21 = smov 0   ;;  %s1414_s22 = smov 0  }
   0xf   :  { %s1416_s23 = smov 0   ;;  %s1418_s24 = smov 0  }
  0x10   :  { %s1420_s25 = smov 0   ;;  %s1422_s26 = smov 0  }
  0x11 LB: > { %s48_s27 = sadd.s32 1, %s1361_s25  ;;  %s80_s28 = sadd.s32 1, %s1353_s23  ;;  %s1365_s26 = sphi %s1422_s26, %s29_s26   ;;  %s1361_s25 = sphi %s1420_s25, %s1795_s25   ;;  %s1357_s24 = sphi %s1418_s24, %s1794_s24   ;;  %s1353_s23 = sphi %s1416_s23, %s1793_s23   ;;  %s1349_s22 = sphi %s1414_s22, %s1792_s22   ;;  %s1345_s21 = sphi %s1412_s21, %s1791_s21  }
  0x12   : > { %p50_p0 = scmp.ge.s32.totalorder %s48_s27, 2  ;;  %p87_p1 = scmp.ne.s32.totalorder %s1353_s23, %s1349_s22 }
  0x13   : > { %p88_p2 = scmp.eq.s32.totalorder %s1365_s26, 0  ;;  %p1036_p5 = scmp.lt.s32.totalorder %s1365_s26, 2 }
  0x14   : > { %s1797_s27 = smov (%p50_p0, %s48_s27), 0  ;;  %s1751_s30 = sand.u32 1, %s1365_s26  }
  0x15   : > { %1765 = sst [smem:[#allocation24_spill]] %s1797_s27  ;;  %p89_p4 = por %p88_p2, %p87_p1 }
  0x16   : > { %s75_s29 = ssub.s32 %s1361_s25, %s1797_s27  ;;  %s1458_s7 = sand.u32 1, %s1353_s23  }
  0x17   : > { %p78_p6 = scmp.eq.s32.totalorder %s75_s29, 0  ;;  %s981_s8 = sshll.u32 %s1361_s25, 8 }
  0x18   : > { %s1750_s10 = sshll.u32 %s1458_s7, 4  ;;  %s1767_s1 = sld [smem:[#allocation26_spill]] }
  0x19   : > { %s1462_s9 = scalar_select %p78_p6, %s1353_s23, %s80_s28  }
  0x1a   : > { %p1468_p7 = pnand %p1036_p5, %p89_p4  ;;  %s274_s15 = scalar_lea.vmem [#allocation10], %s1750_s10 }
  0x1b   : > { %1766 = sst [smem:[#allocation25_spill]] %s1462_s9  ;;  %s285_s16 = sshll.u32 %s274_s15, 4  ;;  %s286_s16 = int_to_ptr.vmem [resolvable:$true] %s285_s16 }
  0x1c   : > { %s1476_s17 = scalar_lea.sflag [#allocation11], %s1751_s30  ;;  %p1480_p8 = pneg %p1468_p7 }
  0x1d   : > { %s1120_s19 = scalar_lea.vmem %s286_s16, 256  ;;  %s1367_s20 = smov [#allocation10]  }
  0x1e   : > { %s283_s13 = scalar_lea.hbm %s1767_s1, %s981_s8  ;;  %p1121_p9 = scmp.ne.s32.totalorder %s286_s16, %s1120_s19 }
  0x1f   : > { %s1125_s28 = sshll.u32 %s1367_s20, 4  ;;  %s1126_s28 = int_to_ptr.vmem [resolvable:$false] %s1125_s28 }
  0x20   : > { %p1123_p10 = pnand %p1121_p9, %p1480_p8  ;;  %s1127_s29 = scalar_lea.vmem %s1126_s28, 512 }
  0x21   : > { %p1128_p12 = scmp.lt.s32.totalorder %s286_s16, %s1126_s28  ;;  %p1129_p13 = scmp.lt.s32.totalorder %s1127_s29, %s1120_s19 }
  0x22   : > { %p1124_p11 = pneg %p1123_p10 }
  0x23   : > { %p1130_p0 = por %p1129_p13, %p1128_p12 }
  0x25   : > { %p1131_p2 = pnand %p1130_p0, %p1124_p11 }
  0x27   : > { %1134 = shalt.err (!%p1131_p2)
}
  0x28   : > { %1018 = dma.hbm_to_vmem [thread:$0]  (!%p1468_p7), %s283_s13, 256, %s286_s16, %s1476_s17  }
  0x29   : > { %s1770_s2 = sld [smem:[#allocation27_spill]]  ;;  %s953_s20 = sshll.u32 %s1458_s7, 5 }
  0x2a   : > { %s983_s10 = sshll.u32 %s1361_s25, 9  ;;  %s1771_s3 = sld [smem:[#allocation28_spill]] }
  0x2b   : > { %s318_s30 = scalar_lea.vmem [#allocation13], %s953_s20  ;;  %s1772_s4 = sld [smem:[#allocation29_spill]] }
  0x2c   : > { %s326_s1 = sshll.u32 %s318_s30, 4  ;;  %s1773_s13 = sand.u32 1, %s1365_s26   ;;  %s327_s1 = int_to_ptr.vmem [resolvable:$true] %s326_s1 }
  0x2d   : > { %s1506_s16 = scalar_lea.sflag [#allocation14], %s1773_s13  ;;  %s1148_s11 = scalar_lea.vmem %s327_s1, 512 }
  0x2e   : > { %p1149_p4 = scmp.ne.s32.totalorder %s327_s1, %s1148_s11 }
  0x2f   : > { %s1492_s15 = scalar_lea.hbm %s1770_s2, %s981_s8  ;;  %s1368_s8 = smov [#allocation13]  }
  0x30   : > { %s325_s29 = scalar_lea.hbm %s1771_s3, %s983_s10  ;;  %p1151_p5 = pnand %p1149_p4, %p1480_p8 }
  0x31   : > { %s1502_s6 = scalar_lea.hbm %s1772_s4, %s983_s10  ;;  %s1153_s12 = sshll.u32 %s1368_s8, 4  ;;  %s1154_s12 = int_to_ptr.vmem [resolvable:$false] %s1153_s12 }
  0x32   : > { %p1152_p6 = pneg %p1151_p5  ;;  %s1155_s28 = scalar_lea.vmem %s1154_s12, 1024 }
  0x33   : > { %p1156_p9 = scmp.lt.s32.totalorder %s327_s1, %s1154_s12  ;;  %p1157_p10 = scmp.lt.s32.totalorder %s1155_s28, %s1148_s11 }
  0x35   : > { %p1158_p11 = por %p1157_p10, %p1156_p9 }
  0x37   : > { %p1159_p12 = pnand %p1158_p11, %p1152_p6 }
  0x39   : > { %1162 = shalt.err (!%p1159_p12)
}
  0x3a   : > { %s1754_s27 = smov 128   ;;  %s1756_s30 = smov 8  }
  0x3b   : > { %1024 = dma.hbm_to_vmem [thread:$0]  (!%p1468_p7), %s325_s29, 512, %s327_s1, %s1506_s16, %s1754_s27, %s1754_s27, %s1756_s30  }
  0x3c   : > { %s340_s9 = scalar_lea.vmem [#allocation15], %s953_s20  ;;  %s1519_s19 = sadd.s32 4294967295, %s1365_s26  }
  0x3d   : > { %s348_s10 = sshll.u32 %s340_s9, 4  ;;  %s943_s13 = sadd.s32 4294967294, %s1365_s26   ;;  %s1516_s10 = int_to_ptr.vmem [resolvable:$true] %s348_s10 }
  0x3e   : > { %p93_p13 = scmp.ne.s32.totalorder %s1349_s22, %s1345_s21  ;;  %p1758_p0 = scmp.eq.s32.totalorder %s1519_s19, 0 }
  0x3f   : > { %p231_p2 = scmp.eq.s32.totalorder %s1519_s19, 1  ;;  %p237_p4 = scmp.eq.s32.totalorder %s943_s13, 1 }
  0x40   : > { %p1528_p5 = por %p1758_p0, %p93_p13  ;;  %p944_p6 = scmp.ge.s32.totalorder %s1365_s26, 1 }
  0x41   : > { %p1536_p9 = por %p231_p2, %p87_p1  ;;  %p1540_p10 = por %p237_p4, %p93_p13 }
  0x42   : > { %p244_p11 = scmp.lt.s32.totalorder %s1365_s26, 3  ;;  %s1777_s29 = sshll.u32 %s1458_s7, 4 }
  0x43   : > { %s1775_s1 = scalar_select %p1536_p9, 1, 0 }
  0x44   : > { %s1776_s20 = scalar_select %p1540_p10, 1, 0 }
  0x45   : > { %s296_s8 = scalar_lea.vmem [#allocation12], %s1777_s29  ;;  %p1547_p12 = pnand %p944_p6, %p244_p11 }
  0x46   : > { %s307_s12 = sshll.u32 %s296_s8, 4  ;;  %s1371_s9 = smov [#allocation7]   ;;  %s308_s12 = int_to_ptr.vmem [resolvable:$true] %s307_s12 }
  0x47   : > { %s256_s13 = sshll.u32 %s1371_s9, 4  ;;  %p1011_p1 = pneg %p1547_p12  ;;  %s1551_s13 = int_to_ptr.vmem [resolvable:$true] %s256_s13 }
  0x48   : > { %s1176_s27 = scalar_lea.vmem %s308_s12, 256  ;;  %s1372_s30 = smov [#allocation12]  }
  0x49   : > { %p1177_p13 = scmp.ne.s32.totalorder %s308_s12, %s1176_s27  ;;  %s1181_s29 = sshll.u32 %s1372_s30, 4  ;;  %s1182_s29 = int_to_ptr.vmem [resolvable:$false] %s1181_s29 }
  0x4a   : > { %s1183_s8 = scalar_lea.vmem %s1182_s29, 512  ;;  %p1184_p6 = scmp.lt.s32.totalorder %s308_s12, %s1182_s29 }
  0x4b   : > { %p1179_p2 = pnand %p1177_p13, %p1480_p8  ;;  %p1185_p11 = scmp.lt.s32.totalorder %s1183_s8, %s1176_s27 }
  0x4d   : > { %p1180_p4 = pneg %p1179_p2  ;;  %p1186_p3 = por %p1185_p11, %p1184_p6 }
  0x4f   : > { %p1187_p0 = pnand %p1186_p3, %p1180_p4 }
  0x51   : > { %1190 = shalt.err (!%p1187_p0)
}
  0x52   : > { %1021 = dma.hbm_to_vmem [thread:$0]  (!%p1468_p7), %s1492_s15, 256, %s308_s12, %s1476_s17  }
  0x53   : > { %p1779_p13 = scmp.eq.s32.totalorder %s1519_s19, 0  ;;  %s959_s30 = sshll.u32 %s1458_s7, 3 }
  0x54   : > { %s1204_s9 = scalar_lea.vmem %s1516_s10, 512  ;;  %s1373_s29 = smov [#allocation15]  }
  0x55   : > { %p1566_p2 = pnand %p1011_p1, %p1779_p13  ;;  %p1205_p3 = scmp.ne.s32.totalorder %s1516_s10, %s1204_s9 }
  0x56   : > { %s1209_s8 = sshll.u32 %s1373_s29, 4  ;;  %s1210_s8 = int_to_ptr.vmem [resolvable:$false] %s1209_s8 }
  0x57   : > { %p1207_p0 = pnand %p1205_p3, %p1480_p8  ;;  %s1211_s2 = scalar_lea.vmem %s1210_s8, 1024 }
  0x58   : > { %p1212_p6 = scmp.lt.s32.totalorder %s1516_s10, %s1210_s8  ;;  %p1213_p11 = scmp.lt.s32.totalorder %s1211_s2, %s1204_s9 }
  0x59   : > { %p1208_p4 = pneg %p1207_p0 }
  0x5a   : > { %p1214_p10 = por %p1213_p11, %p1212_p6 }
  0x5c   : > { %p1215_p9 = pnand %p1214_p10, %p1208_p4 }
  0x5e   : > { %1218 = shalt.err (!%p1215_p9)
}
  0x5f   : > { %s1781_s17 = smov 8   ;;  %s1782_s15 = smov 128  }
  0x60   : > { %1027 = dma.hbm_to_vmem [thread:$0]  (!%p1468_p7), %s1502_s6, 512, %s1516_s10, %s1506_s16, %s1782_s15, %s1782_s15, %s1781_s17  }
  0x61   : > { %p1221_p1 = pneg %p1566_p2  ;;  %s1230_s12 = scalar_lea.vmem %s1551_s13, 256 }
  0x62   : > { %p1231_p13 = scmp.ne.s32.totalorder %s1551_s13, %s1230_s12  ;;  %p1238_p9 = scmp.lt.s32.totalorder %s1551_s13, %s1551_s13 }
  0x63   : > { %p1239_p0 = scmp.lt.s32.totalorder %s1230_s12, %s1230_s12 }
  0x64   : > { %p1233_p3 = pnand %p1231_p13, %p1221_p1 }
  0x65   : > { %p1240_p4 = por %p1239_p0, %p1238_p9 }
  0x66   : > { %p1234_p10 = pneg %p1233_p3 }
  0x68   : > { %p1241_p6 = pnand %p1240_p4, %p1234_p10 }
  0x6a   : > { %1244 = shalt.err (!%p1241_p6)
}
  0x6b   : > { %1014 = dma.hbm_to_vmem [thread:$0]  (!%p1566_p2), %s1743_s0, 256, %s1551_s13, [#allocation8], %s1782_s15, %s1782_s15, %s1781_s17  }
  0x6c   : > { %s960_s16 = sshll.u32 %s1361_s25, 7  ;;  %s362_s10 = scalar_lea.vmem [#allocation16], %s959_s30 }
  0x6d   : > { %s370_s9 = sshll.u32 %s362_s10, 4  ;;  %s368_s27 = scalar_lea.hbm %s1748_s5, %s960_s16  ;;  %s371_s9 = int_to_ptr.vmem [resolvable:$true] %s370_s9 }
  0x6e   : > { %s359_s12 = scalar_lea.sflag [#allocation17], %s1458_s7  ;;  %s1258_s3 = scalar_lea.vmem %s371_s9, 128 }
  0x6f   : > { %p1259_p11 = scmp.ne.s32.totalorder %s371_s9, %s1258_s3  ;;  %s1374_s2 = smov [#allocation16]  }
  0x70   : > { %s1263_s6 = sshll.u32 %s1374_s2, 4  ;;  %s1264_s6 = int_to_ptr.vmem [resolvable:$false] %s1263_s6 }
  0x71   : > { %p1261_p1 = pnand %p1259_p11, %p1480_p8  ;;  %s1265_s4 = scalar_lea.vmem %s1264_s6, 256 }
  0x72   : > { %p1266_p2 = scmp.lt.s32.totalorder %s371_s9, %s1264_s6  ;;  %p1267_p3 = scmp.lt.s32.totalorder %s1265_s4, %s1258_s3 }
  0x73   : > { %p1262_p13 = pneg %p1261_p1 }
  0x74   : > { %p1268_p10 = por %p1267_p3, %p1266_p2 }
  0x76   : > { %p1269_p9 = pnand %p1268_p10, %p1262_p13 }
  0x78   : > { %1272 = shalt.err (!%p1269_p9)
}
  0x79   : > { %1030 = dma.hbm_to_vmem [thread:$0]  (!%p1468_p7), %s368_s27, 128, %s371_s9, %s359_s12  }
  0x7a   : > { %379 = sbr.rel (%p1547_p12) target bundleno = 420 (0x1a4), region = 44  ;;  %p1783_p0 = scmp.eq.s32.totalorder (!%p1547_p12), %s1519_s19, 0 }
  0x7f   : > { %1324 = dma.done.wait (%p1783_p0), [#allocation8], 256   ;;  %p1784_p8 = pmov %p1783_p0 }
  0x80   : > { %s385_s7 = sand.u32 1, %s1519_s19   ;;  %s1618_s3 = sand.u32 1, %s1349_s22  }
  0x81   : > { %1326 = vsyncadd (%p1784_p8), [#allocation8], 4294967040  ;;  %s963_s4 = sshll.u32 %s1618_s3, 4  ;;  %s386_s18 = scalar_lea.sflag [#allocation11], %s385_s7 }
  0x82   : > { %s389_s14 = scalar_lea.vmem [#allocation10], %s963_s4 }
  0x83   : > { %1328 = dma.done.wait (%p1528_p5), %s386_s18, 512  }
  0x84   : > { %1330 = vsyncadd (%p1528_p5), %s386_s18, 4294966784  ;;  %s965_s28 = sshll.u32 %s1618_s3, 5  ;;  %s398_s13 = scalar_lea.vmem [#allocation12], %s963_s4 }
  0x85   : > { %s404_s30 = scalar_lea.sflag [#allocation14], %s385_s7  ;;  %s407_s17 = scalar_lea.vmem [#allocation13], %s965_s28 }
  0x86   : > { %1332 = dma.done.wait (%p1528_p5), %s404_s30, 1024  }
  0x87   : > { %1334 = vsyncadd (%p1528_p5), %s404_s30, 4294966272  ;;  %s967_s19 = sshll.u32 %s1618_s3, 3  ;;  %s1631_s15 = scalar_lea.vmem [#allocation15], %s965_s28 }
  0x88   : > { %s422_s16 = scalar_lea.sflag [#allocation17], %s1618_s3  ;;  %s1634_s10 = scalar_lea.vmem [#allocation16], %s967_s19 }
  0x89   : > { %1336 = dma.done.wait (%p1528_p5), %s422_s16, 128  }
  0x8a   : > { %1338 = vsyncadd (%p1528_p5), %s422_s16, 4294967168  ;;  %vm490_vm0 = vcmask 261120   ;;  %v1375_v0 = vmov 0.0   ;;  %v1644_v1 = vld [vmem:[%s398_s13] sm:$0xff]  ;;  %v1646_v2 = vld [vmem:[%s398_s13 + $0x8] sm:$0xff]  ;;  %s978_s2 = sshll.u32 %s1357_s24, 4 }
  0x8b   : > { %491 = vst.msk [vmem:[#allocation5] sm:$0xff] %vm490_vm0, %v1375_v0  ;;  %492 = vst.msk [vmem:[#allocation6] sm:$0xff] %vm490_vm0, %v1375_v0  ;;  %v1648_v3 = vld [vmem:[%s389_s14] sm:$0xff]  ;;  %vm529_vm1 = vcmp.eq.f32.partialorder %v1644_v1, 1.0  ;;  %vm530_vm2 = vcmp.eq.f32.partialorder %v1646_v2, 1.0  ;;  %v1652_v4 = vld [vmem:[%s389_s14 + $0x8] sm:$0xff] }
  0x8c   : > { %v584_v5 = vld [vmem:[#allocation7] sm:$0xff]  ;;  %v1655_v6 = vsel %vm529_vm1, 1.0, %v1375_v0  ;;  %v1658_v7 = vsel %vm530_vm2, 1.0, %v1375_v0  ;;  %v497_v8 = vsub.f32 0.0, %v1648_v3  ;;  %v498_v9 = vsub.f32 0.0, %v1652_v4  ;;  %v586_v10 = vld [vmem:[#allocation7 + $0x8] sm:$0xff] }
  0x8d   : > { %v587_v11 = vld [vmem:[%s407_s17] sm:$0xff]  ;;  %v687_v12 = vadd.f32 %v1658_v7, %v1655_v6  ;;  %v972_v13 = vld [vmem:[%s407_s17 + $0x8] sm:$0xff]  ;;  %v973_v14 = vld [vmem:[%s407_s17 + $0x10] sm:$0xff]  ;;  %vm535_vm4 = vcmp.lt.f32.partialorder %v1644_v1, 1.0  ;;  %vm536_vm5 = vcmp.lt.f32.partialorder %v1646_v2, 1.0  ;;  %s472_s6 = scalar_lea.vmem [#allocation18], %s1618_s3 }
  0x8e   : > { %v974_v15 = vld [vmem:[%s407_s17 + $0x18] sm:$0xff]  ;;  %v499_v16 = vmul.f32 1.442695, %v497_v8  ;;  %v501_v17 = vmul.f32 1.442695, %v498_v9  ;;  %v588_v18 = vsub.f32 %v584_v5, %v587_v11  ;;  %v598_v19 = vld [vmem:[%s1631_s15] sm:$0xff]  ;;  %v591_v22 = vsub.f32 %v586_v10, %v972_v13 }
  0x8f   : > { %688 = vadd.xlane.f32.xlu1 %v687_v12  ;;  %v975_v20 = vld [vmem:[%s1631_s15 + $0x8] sm:$0xff]  ;;  %v976_v21 = vld [vmem:[%s1631_s15 + $0x10] sm:$0xff]  ;;  %v594_v23 = vadd.f32 %v973_v14, %v584_v5  ;;  %v597_v24 = vadd.f32 %v974_v15, %v586_v10  ;;  %v977_v25 = vld [vmem:[%s1631_s15 + $0x18] sm:$0xff]  ;;  %v541_v15 = vsub.f32 1.0, %v1644_v1  ;;  %s756_s7 = sshll.u32 %s472_s6, 4  ;;  %s1785_s14 = sld [smem:[#allocation30_spill]]  ;;  %s757_s7 = int_to_ptr.vmem [resolvable:$true] %s756_s7 }
  0x90   : > { %1091 = vpow2.f32 %v499_v16  ;;  %v607_v26 = vmax.f32 %v588_v18, %v598_v19  ;;  %v622_v27 = vsub.f32 %v976_v21, %v598_v19  ;;  %v624_v28 = vsub.f32 %v977_v25, %v975_v20  ;;  %v1673_v46 = vld [vmem:[%s1634_s10] sm:$0xff]  ;;  %s744_s13 = scalar_lea.sflag [#allocation9], %s1618_s3  ;;  %s1273_s30 = scalar_lea.vmem %s757_s7, 16 }
  0x91   : > { %1093 = vpow2.f32 %v501_v17  ;;  %v606_v29 = vmin.f32 %v594_v23, %v976_v21  ;;  %v611_v30 = vmin.f32 %v597_v24, %v977_v25  ;;  %v612_v31 = vmax.f32 %v591_v22, %v975_v20  ;;  %p1274_p7 = scmp.ne.s32.totalorder %s757_s7, %s1273_s30  ;;  %p1786_p5 = scmp.ne.s32.totalorder %s1775_s1, 0 }
  0x92   : > { %v617_v32 = vsub.f32 %v594_v23, %v588_v18  ;;  %v619_v33 = vsub.f32 %v597_v24, %v591_v22  ;;  %v623_v34 = vadd.f32 1.0, %v622_v27  ;;  %v625_v35 = vadd.f32 1.0, %v624_v28  ;;  %v656_v41 = vld [vmem:[#allocation6] sm:$0xff]  ;;  %s1376_s17 = smov [#allocation18]  }
  0x93   : > { %v629_v36 = vmax.f32 %v594_v23, %v976_v21  ;;  %v608_v37 = vsub.f32 %v606_v29, %v607_v26  ;;  %v613_v38 = vsub.f32 %v611_v30, %v612_v31  ;;  %v630_v40 = vmin.f32 %v588_v18, %v598_v19  ;;  %p1275_p12 = pnand %p1274_p7, %p1786_p5  ;;  %s1277_s19 = sshll.u32 %s1376_s17, 4  ;;  %s1278_s19 = int_to_ptr.vmem [resolvable:$false] %s1277_s19 }
  0x94   : > { %v618_v39 = vadd.f32 1.0, %v617_v32  ;;  %v620_v42 = vadd.f32 1.0, %v619_v33  ;;  %v626_v43 = vmul.f32 %v625_v35, %v623_v34  ;;  %v634_v44 = vmax.f32 %v597_v24, %v977_v25  ;;  %s1279_s24 = scalar_lea.vmem %s1278_s19, 32  ;;  %p1280_p6 = scmp.lt.s32.totalorder %s757_s7, %s1278_s19 }
  0x95   : > { %v635_v45 = vmin.f32 %v591_v22, %v975_v20  ;;  %v609_v47 = vadd.f32 1.0, %v608_v37  ;;  %v614_v48 = vadd.f32 1.0, %v613_v38  ;;  %v631_v49 = vsub.f32 %v629_v36, %v630_v40  ;;  %s754_s28 = scalar_lea.hbm %s1785_s14, %s978_s2  ;;  %p1276_p4 = pneg %p1275_p12 }
  0x96   : > { %v621_v50 = vmul.f32 %v620_v42, %v618_v39  ;;  %v657_v52 = vadd.f32 %v656_v41, %v1673_v46  ;;  %vm640_vm3 = vcmp.gt.f32.partialorder %v1673_v46, 0.0  ;;  %v542_v17 = vsub.f32 1.0, %v1646_v2  ;;  %p1281_p11 = scmp.lt.s32.totalorder %s1279_s24, %s1273_s30 }
  0x97   : > { %v636_v51 = vsub.f32 %v634_v44, %v635_v45  ;;  %v610_v53 = vmax.f32 %v609_v47, 0.0  ;;  %v615_v54 = vmax.f32 %v614_v48, 0.0  ;;  %v632_v55 = vadd.f32 1.0, %v631_v49 }
  0x98   : > { %v627_v56 = vadd.f32 %v626_v43, %v621_v50  ;;  %658 = vst.msk [vmem:[#allocation6] sm:$0xff] %vm490_vm0, %v657_v52  ;;  %v543_v23 = vmul.f32 %v541_v15, %v541_v15  ;;  %v544_v28 = vmul.f32 %v542_v17, %v542_v17  ;;  %p1282_p1 = por %p1281_p11, %p1280_p6 }
  0x99   : > { %v637_v57 = vadd.f32 1.0, %v636_v51  ;;  %v616_v58 = vmul.f32 %v615_v54, %v610_v53  ;;  %v633_v59 = vmax.f32 %v632_v55, 0.0  ;;  %v970_v55 = vsel %vm535_vm4, 1.0, %v1375_v0 }
  0x9a   : > { %v545_v50 = vmul.f32 %v543_v23, %v543_v23  ;;  %v546_v52 = vmul.f32 %v544_v28, %v544_v28  ;;  %p1283_p13 = pnand %p1282_p1, %p1276_p4 }
  0x9b   : > { %v638_v60 = vmax.f32 %v637_v57, 0.0  ;;  %v628_v61 = vsub.f32 %v627_v56, %v616_v58 }
  0x9d   : > { %v1092_v62 = vpop.eup %1091  ;;  %v639_v63 = vmul.f32 %v638_v60, %v633_v59  ;;  %v641_v11 = vsel %vm640_vm3, %v628_v61, 1.0  ;;  %v649_v60 = vld [vmem:[#allocation5] sm:$0xff] }
  0x9e   : > { %v1094_v5 = vpop.eup %1093  ;;  %v503_v10 = vadd.f32 1.0, %v1092_v62  ;;  %1095 = vrcp.f32 %v641_v11 }
  0x9f   : > { %v504_v12 = vadd.f32 1.0, %v1094_v5  ;;  %v642_v13 = vsel %vm640_vm3, %v639_v63, 1.0 }
  0xa0   : > { %1097 = vrcp.f32 %v503_v10  ;;  %v645_v26 = vsub.f32 %v642_v13, %v641_v11 }
  0xa1   : > { %1099 = vrcp.f32 %v504_v12 }
  0xa2   : > { %1101 = vlog2.f32 %v503_v10 }
  0xa3   : > { %1103 = vlog2.f32 %v504_v12 }
  0xa4   : > { %1105 = vrcp.f32 %v642_v13 }
  0xab   : > { %v1096_v14 = vpop.eup %1095 }
  0xac   : > { %v644_v34 = vmul.f32 %v1096_v14, %v616_v58  ;;  %v971_v58 = vsel %vm536_vm5, 1.0, %v1375_v0 }
  0xad   : > { %v1098_v16 = vpop.eup %1097 }
  0xae   : > { %v1100_v18 = vpop.eup %1099  ;;  %v509_v19 = vmax.f32 %v1098_v16, 0.0001 }
  0xaf   : > { %v1102_v20 = vpop.eup %1101  ;;  %v510_v21 = vmax.f32 %v1100_v18, 0.0001 }
  0xb0   : > { %v1104_v22 = vpop.eup %1103  ;;  %v511_v24 = vmin.f32 %v509_v19, 0.9999  ;;  %v514_v25 = vmul.f32 0.6931472, %v1102_v20 }
  0xb1   : > { %v1106_v27 = vpop.eup %1105  ;;  %v512_v29 = vmin.f32 %v510_v21, 0.9999  ;;  %v516_v30 = vmul.f32 0.6931472, %v1104_v22 }
  0xb2   : > { %v517_v31 = vsub.f32 0.0, %v514_v25  ;;  %v547_v32 = vsub.f32 1.0, %v511_v24  ;;  %v523_v33 = vsub.f32 %v497_v8, %v514_v25  ;;  %v555_v38 = vmul.f32 %v511_v24, %v511_v24 }
  0xb3   : > { %v518_v35 = vsub.f32 0.0, %v516_v30  ;;  %v548_v36 = vsub.f32 1.0, %v512_v29  ;;  %v524_v37 = vsub.f32 %v498_v9, %v516_v30  ;;  %v647_v42 = vmul.f32 %v1106_v27, %v645_v26 }
  0xb4   : > { %v519_v39 = vmax.f32 %v517_v31, -9.2103405  ;;  %v549_v40 = vmul.f32 %v547_v32, %v547_v32  ;;  %v525_v41 = vmax.f32 %v523_v33, -9.2103405  ;;  %v556_v47 = vmul.f32 %v512_v29, %v512_v29 }
  0xb5   : > { %v520_v43 = vmax.f32 %v518_v35, -9.2103405  ;;  %v550_v44 = vmul.f32 %v548_v36, %v548_v36  ;;  %v526_v45 = vmax.f32 %v524_v37, -9.2103405  ;;  %v648_v3 = vsub.f32 %v644_v34, %v647_v42 }
  0xb6   : > { %v521_v48 = vmin.f32 %v519_v39, -0.000100005  ;;  %v527_v49 = vmin.f32 %v525_v41, -0.000100005 }
  0xb7   : > { %v522_v8 = vmin.f32 %v520_v43, -0.000100005  ;;  %v528_v51 = vmin.f32 %v526_v45, -0.000100005  ;;  %v650_v53 = vsub.f32 1.0, %v648_v3 }
  0xb8   : > { %v551_v4 = vmul.f32 %v549_v40, %v521_v48  ;;  %v557_v9 = vmul.f32 %v555_v38, %v527_v49  ;;  %v720_v49 = vlaneseq }
  0xb9   : > { %v552_v54 = vmul.f32 %v550_v44, %v522_v8  ;;  %v558_v56 = vmul.f32 %v556_v47, %v528_v51  ;;  %v651_v61 = vmul.f32 %v650_v53, %v1673_v46 }
  0xba   : > { %v553_v57 = vmul.f32 %v1655_v6, %v551_v4  ;;  %v559_v59 = vmul.f32 %v557_v9, %v545_v50  ;;  %v709_v6 = vld [vmem:[#allocation6] sm:$0xff]  ;;  %v721_v50 = vand.u32 127, %v720_v49 }
  0xbb   : > { %v554_v2 = vmul.f32 %v1658_v7, %v552_v54  ;;  %v560_v62 = vmul.f32 %v558_v56, %v546_v52  ;;  %v652_v5 = vsel %vm640_vm3, %v651_v61, 0.0  ;;  %v710_v0 = vsel %vm490_vm0, %v709_v6, 0.0 }
  0xbc   : > { %v561_v63 = vmul.f32 %v970_v55, %v559_v59  ;;  %v653_v1 = vadd.f32 %v652_v5, %v649_v60  ;;  %vm722_vm6 = vcmp.eq.s32.totalorder %v721_v50, 0  ;;  %vm726_vm7 = vcmp.eq.s32.totalorder %v721_v50, 1 }
  0xbd   : > { %v663_v10 = vadd.f32 %v554_v2, %v553_v57  ;;  %v562_v11 = vmul.f32 %v971_v58, %v560_v62  ;;  %vm730_vm8 = vcmp.eq.s32.totalorder %v721_v50, 2  ;;  %vm734_vm9 = vcmp.eq.s32.totalorder %v721_v50, 3 }
  0xbe   : > { %655 = vst.msk [vmem:[#allocation5] sm:$0xff] %vm490_vm0, %v653_v1  ;;  %vm738_vm10 = vcmp.eq.s32.totalorder %v721_v50, 4 }
  0xbf   : > { %664 = vadd.xlane.f32.xlu0 %v663_v10  ;;  %v675_v12 = vadd.f32 %v562_v11, %v561_v63 }
  0xc3   : > { %676 = vadd.xlane.f32.xlu0 %v675_v12 }
  0xc5   : > { %v697_v13 = vld [vmem:[#allocation5] sm:$0xff] }
  0xc6   : > { %v699_v14 = vsel %vm490_vm0, %v697_v13, 0.0 }
  0xc7   : > { %711 = vadd.xlane.f32.xlu0 %v710_v0  ;;  %700 = vadd.xlane.f32.xlu1 %v699_v14 }
 0x118   : > { %v689_v7 = vpop.xlane.xlu1 %688 }
 0x119   : > { %v690_v15 = vrot.slane %v689_v7, 4 }
 0x11b   : > { %v691_v46 = vadd.f32 %v690_v15, %v689_v7 }
 0x11d   : > { %v692_v19 = vrot.slane %v691_v46, 2 }
 0x11f   : > { %v693_v26 = vadd.f32 %v692_v19, %v691_v46 }
 0x121   : > { %v694_v36 = vrot.slane %v693_v26, 1 }
 0x123   : > { %v695_v43 = vadd.f32 %v694_v36, %v693_v26 }
 0x148   : > { %v665_v16 = vpop.xlane.xlu0 %664 }
 0x149   : > { %v666_v17 = vrot.slane %v665_v16, 4 }
 0x14b   : > { %v667_v18 = vadd.f32 %v666_v17, %v665_v16 }
 0x14c   : > { %v677_v20 = vpop.xlane.xlu0 %676 }
 0x14d   : > { %v668_v21 = vrot.slane %v667_v18, 2  ;;  %v678_v22 = vrot.slane %v677_v20, 4 }
 0x14f   : > { %v679_v23 = vadd.f32 %v678_v22, %v677_v20  ;;  %v669_v24 = vadd.f32 %v668_v21, %v667_v18 }
 0x150   : > { %v712_v25 = vpop.xlane.xlu0 %711  ;;  %v701_v28 = vpop.xlane.xlu1 %700 }
 0x151   : > { %v680_v27 = vrot.slane %v679_v23, 2  ;;  %v713_v29 = vrot.slane %v712_v25, 4  ;;  %v670_v30 = vrot.slane %v669_v24, 1  ;;  %v702_v31 = vrot.slane %v701_v28, 4 }
 0x153   : > { %v714_v32 = vadd.f32 %v713_v29, %v712_v25  ;;  %v671_v33 = vadd.f32 %v670_v30, %v669_v24  ;;  %v681_v34 = vadd.f32 %v680_v27, %v679_v23  ;;  %v703_v35 = vadd.f32 %v702_v31, %v701_v28 }
 0x155   : > { %v715_v37 = vrot.slane %v714_v32, 2  ;;  %985 = vpush %v671_v33  ;;  %v682_v38 = vrot.slane %v681_v34, 1  ;;  %v704_v39 = vrot.slane %v703_v35, 2 }
 0x157   : > { %v716_v40 = vadd.f32 %v715_v37, %v714_v32  ;;  %v683_v41 = vadd.f32 %v682_v38, %v681_v34  ;;  %v705_v42 = vadd.f32 %v704_v39, %v703_v35 }
 0x159   : > { %987 = vpush %v683_v41  ;;  %v717_v44 = vrot.slane %v716_v40, 1  ;;  %v706_v45 = vrot.slane %v705_v42, 1 }
 0x15a   : > { %989 = vpush %v695_v43 }
 0x15b   : > { %v718_v47 = vadd.f32 %v717_v44, %v716_v40  ;;  %v707_v48 = vadd.f32 %v706_v45, %v705_v42 }
 0x15d   : > { %991 = vpush %v707_v48 }
 0x15e   : > { %993 = vpush %v718_v47 }
 0x186   : > { %s986_s11 = spop %985 }
 0x18a   : > { %s988_s9 = spop %987 }
 0x18b   : > { %s723_s29 = sadd.f32 %s988_s9, %s986_s11  ;;  %v727_v3 = vstv %s988_s9  ;;  %s990_s8 = spop %989 }
 0x18c   : > { %v731_v51 = vstv %s990_s8  ;;  %v728_v4 = vsel %vm726_vm7, %v727_v3, 0.0 }
 0x18d   : > { %v724_v8 = vstv %s723_s29  ;;  %v732_v53 = vsel %vm730_vm8, %v731_v51, 0.0 }
 0x18e   : > { %v725_v52 = vsel %vm722_vm6, %v724_v8, 0.0  ;;  %s992_s27 = spop %991 }
 0x18f   : > { %v729_v9 = vadd.f32 %v728_v4, %v725_v52  ;;  %v735_v54 = vstv %s992_s27  ;;  %s994_s12 = spop %993 }
 0x190   : > { %v739_v56 = vstv %s994_s12  ;;  %v736_v57 = vsel %vm734_vm9, %v735_v54, 0.0 }
 0x191   : > { %v733_v55 = vadd.f32 %v732_v53, %v729_v9  ;;  %v740_v59 = vsel %vm738_vm10, %v739_v56, 0.0 }
 0x193   : > { %v737_v58 = vadd.f32 %v736_v57, %v733_v55 }
 0x195   : > { %v741_v60 = vadd.f32 %v740_v59, %v737_v58 }
 0x197   : > { %742 = vst [vmem:[%s472_s6] sm:$0x1] %v741_v60 }
 0x198   : > { %1286 = shalt.err (!%p1283_p13)
}
 0x199   : > { %s1287_s15 = scalar_lea.hbm %s754_s28, 16  ;;  %s1291_s10 = scalar_lea.hbm %s1785_s14, 32 }
 0x19a   : > { %p1288_p2 = scmp.ne.s32.totalorder %s754_s28, %s1287_s15  ;;  %p1292_p9 = scmp.lt.s32.totalorder %s754_s28, %s1785_s14 }
 0x19b   : > { %p1293_p0 = scmp.lt.s32.totalorder %s1291_s10, %s1287_s15 }
 0x19c   : > { %p1289_p3 = pnand %p1288_p2, %p1786_p5 }
 0x19d   : > { %p1294_p8 = por %p1293_p0, %p1292_p9 }
 0x19e   : > { %p1290_p10 = pneg %p1289_p3 }
 0x1a0   : > { %p1295_p7 = pnand %p1294_p8, %p1290_p10 }
 0x1a2   : > { %1298 = shalt.err (!%p1295_p7)
}
 0x1a3   : > { %1009 = dma.vmem_to_hbm [thread:$0]  (%p1786_p5), %s757_s7, 16, %s754_s28, %s744_s13  }
 0x1a4 PF: > { %s768_s29 = sand.u32 1, %s1345_s21   ;;  %p1787_p12 = scmp.ne.s32.totalorder %s1776_s20, 0 }
 0x1a5   : > { %p1788_p4 = scmp.ge.s32.totalorder %s1365_s26, 2  ;;  %s769_s8 = scalar_lea.sflag [#allocation9], %s768_s29 }
 0x1a7   : > { %p1032_p6 = pnand %p1788_p4, %p1787_p12 }
 0x1a9   : > { %p1033_p11 = pneg %p1032_p6 }
 0x1ab   : > { %1340 = dma.done.wait (%p1033_p11), %s769_s8, 16  }
 0x1ac   : > { %1342 = vsyncadd (%p1033_p11), %s769_s8, 4294967280  ;;  %s29_s26 = sadd.s32 1, %s1365_s26   ;;  %s1789_s27 = sld [smem:[#allocation25_spill]] }
 0x1ad   : > { %p26_p1 = scmp.ge.s32.totalorder %s29_s26, 4   ;;  %s1790_s1 = sld [smem:[#allocation24_spill]] }
 0x1ae   : > { %s1791_s21 = smov %s1349_s22  ;;  %s1792_s22 = smov %s1353_s23 }
 0x1af   : > { %s1794_s24 = smov %s1361_s25  ;;  %28 = sbr.rel (!%p26_p1) target bundleno = 17 (0x11), region = 161 }
 0x1b2   : > { %s1793_s23 = smov %s1789_s27 }
 0x1b3   : > { %s1795_s25 = smov %s1790_s1 }
 0x1b4   :  { %773 = vsyncpa [#allocation8], 1 }
 0x1b5   :  { %775 = vsyncpa [#allocation8 + $0x1], 1 }
 0x1b6   :  { %776 = vsyncpa [#allocation11], 1 }
 0x1b7   :  { %778 = vsyncpa [#allocation11 + $0x1], 1 }
 0x1b8   :  { %779 = vsyncpa [#allocation14], 1 }
 0x1b9   :  { %781 = vsyncpa [#allocation14 + $0x1], 1 }
 0x1ba   :  { %782 = vsyncpa [#allocation17], 1 }
 0x1bb   :  { %784 = vsyncpa [#allocation17 + $0x1], 1 }
 0x1bc   :  { %785 = vsyncpa [#allocation9], 1 }
 0x1bd   :  { %787 = vsyncpa [#allocation9 + $0x1], 1 }

</bundles_post_ra>
